<compile_context>
chip_gen: v6e
topology: v6e:2x2x1
jax: 0.10.0
libtpu: 0.0.40
codegen_flags: <defaults>
</compile_context>

<pallas_src>
import jax
import jax.numpy as jnp
from jax.experimental import pallas as pl
from jax.experimental.pallas import tpu as pltpu

# ---- problem sizes (synthetic, consistent with the module __init__) ----
DIM_X = 3                    # observer.dim_x
DIM_Z = 3                    # observer.dim_z
OPT_DIM = 1                  # observer.optionalDim
DIM_IN = DIM_Z + OPT_DIM     # 4
HIDDEN = 40
BATCH = 8
DEFAULT_TILE_N = 512         # lane-dense batch tile (multiple of 128)


def _mlp_kernel(x_ref, w1_ref, b1_ref, wh_ref, bh_ref, w6_ref, b6_ref, o_ref):
    """Whole 6-layer MLP for one batch tile. Activations are (features, batch)."""
    # fc1 (no activation): (40, 4) @ (4, TILE_N) -> (40, TILE_N)
    h = jnp.dot(w1_ref[...], x_ref[...],
                preferred_element_type=jnp.float32) + b1_ref[...]
    # tanh(fc2) .. tanh(fc5): stacked (4, 40, 40) weights / (4, 40, 1) biases
    for l in range(4):
        h = jnp.tanh(
            jnp.dot(wh_ref[l], h, preferred_element_type=jnp.float32)
            + bh_ref[l])
    # fc6 (no activation): (3, 40) @ (40, TILE_N) -> (3, TILE_N), lane-dense store
    o_ref[...] = (jnp.dot(w6_ref[...], h, preferred_element_type=jnp.float32)
                  + b6_ref[...]).astype(o_ref.dtype)


def linear_forward(x, params, *, tile_n=DEFAULT_TILE_N):
    """x: (N, DIM_IN) float32 -> (N, DIM_X) float32."""
    n, dim_in = x.shape
    assert dim_in == DIM_IN

    # Lane-dense batch tile (multiple of 128); don't over-pad tiny batches.
    tile_n = min(tile_n, max(128, ((n + 127) // 128) * 128))
    n_pad = ((n + tile_n - 1) // tile_n) * tile_n
    grid = (n_pad // tile_n,)

    # Wrapper-side layout plumbing: transpose to (features, batch) and pad.
    xt = jnp.zeros((DIM_IN, n_pad), jnp.float32).at[:, :n].set(x.T)

    w1, b1 = params["w1"], params["b1"]                                   # (40,4), (40,1)
    wh = jnp.stack([params["w2"], params["w3"], params["w4"], params["w5"]])  # (4,40,40)
    bh = jnp.stack([params["b2"], params["b3"], params["b4"], params["b5"]])  # (4,40,1)
    w6, b6 = params["w6"], params["b6"]                                   # (3,40), (3,1)

    def resident(arr):
        nd = arr.ndim
        return pl.BlockSpec(arr.shape, lambda i, _nd=nd: (0,) * _nd)

    out_t = pl.pallas_call(
        _mlp_kernel,
        out_shape=jax.ShapeDtypeStruct((DIM_X, n_pad), jnp.float32),
        grid=grid,
        in_specs=[
            pl.BlockSpec((DIM_IN, tile_n), lambda i: (0, i)),   # streamed x tile
            resident(w1), resident(b1),
            resident(wh), resident(bh),
            resident(w6), resident(b6),
        ],
        out_specs=pl.BlockSpec((DIM_X, tile_n), lambda i: (0, i)),
        compiler_params=pltpu.CompilerParams(
            dimension_semantics=("parallel",)),
    )(xt, w1, b1, wh, bh, w6, b6)

    # Back to the module's (batch, features) interface; drop padded rows.
    return out_t[:, :n].T


def init_params(key):
    """nn.Linear-style init U(-1/sqrt(fan_in), 1/sqrt(fan_in)).

    Weights stored PyTorch-style as (out, in); biases as (out, 1).
    """
    sizes = [(DIM_IN, HIDDEN), (HIDDEN, HIDDEN), (HIDDEN, HIDDEN),
             (HIDDEN, HIDDEN), (HIDDEN, HIDDEN), (HIDDEN, DIM_X)]
    params = {}
    for idx, (fan_in, fan_out) in enumerate(sizes, start=1):
        key, kw, kb = jax.random.split(key, 3)
        bound = 1.0 / jnp.sqrt(jnp.float32(fan_in))
        params[f"w{idx}"] = jax.random.uniform(
            kw, (fan_out, fan_in), jnp.float32, -bound, bound)
        params[f"b{idx}"] = jax.random.uniform(
            kb, (fan_out, 1), jnp.float32, -bound, bound)
    return params


def reference_forward(x, p):
    """Pure-JAX reference in the module's (batch, features) layout."""
    h = x @ p["w1"].T + p["b1"].T
    h = jnp.tanh(h @ p["w2"].T + p["b2"].T)
    h = jnp.tanh(h @ p["w3"].T + p["b3"].T)
    h = jnp.tanh(h @ p["w4"].T + p["b4"].T)
    h = jnp.tanh(h @ p["w5"].T + p["b5"].T)
    return h @ p["w6"].T + p["b6"].T


if __name__ == "__main__":
    key = jax.random.PRNGKey(0)
    key, kx = jax.random.split(key)
    x = jax.random.normal(kx, (BATCH, DIM_IN), jnp.float32)
    params = init_params(key)

    out = linear_forward(x, params)
    out = jax.block_until_ready(out)

    ref = reference_forward(x, params)
    assert out.shape == (BATCH, DIM_X)
    assert jnp.allclose(out, ref, atol=1e-4, rtol=1e-4), "mismatch vs reference"
    print("KERNEL_OK")
</pallas_src>

<mosaic_0001>
module attributes {stable_mosaic.version = 11 : i64} {
  func.func @_mlp_kernel(%arg0: i32, %arg1: memref<4x128xf32, #tpu.memory_space<vmem>>, %arg2: memref<40x4xf32, #tpu.memory_space<vmem>>, %arg3: memref<40x1xf32, #tpu.memory_space<vmem>>, %arg4: memref<4x40x40xf32, #tpu.memory_space<vmem>>, %arg5: memref<4x40x1xf32, #tpu.memory_space<vmem>>, %arg6: memref<3x40xf32, #tpu.memory_space<vmem>>, %arg7: memref<3x1xf32, #tpu.memory_space<vmem>>, %arg8: memref<3x128xf32, #tpu.memory_space<vmem>>) attributes {dimension_semantics = [#tpu.dimension_semantics<parallel>], iteration_bounds = array<i64: 1>, scalar_prefetch = 0 : i64, scratch_operands = 0 : i64, tpu.core_type = #tpu.core_type<tc>, window_params = [{transform_indices = @transform_0, window_bounds = array<i64: 4, 128>}, {pipeline_mode = #tpu.pipeline_mode<synchronous>, transform_indices = @transform_1, window_bounds = array<i64: 40, 4>}, {pipeline_mode = #tpu.pipeline_mode<synchronous>, transform_indices = @transform_2, window_bounds = array<i64: 40, 1>}, {pipeline_mode = #tpu.pipeline_mode<synchronous>, transform_indices = @transform_3, window_bounds = array<i64: 4, 40, 40>}, {pipeline_mode = #tpu.pipeline_mode<synchronous>, transform_indices = @transform_4, window_bounds = array<i64: 4, 40, 1>}, {pipeline_mode = #tpu.pipeline_mode<synchronous>, transform_indices = @transform_5, window_bounds = array<i64: 3, 40>}, {pipeline_mode = #tpu.pipeline_mode<synchronous>, transform_indices = @transform_6, window_bounds = array<i64: 3, 1>}, {transform_indices = @transform_7, window_bounds = array<i64: 3, 128>}]} {
    %c0 = arith.constant 0 : index
    %c0_0 = arith.constant 0 : index
    %0 = vector.load %arg2[%c0, %c0_0] : memref<40x4xf32, #tpu.memory_space<vmem>>, vector<40x4xf32>
    %c0_1 = arith.constant 0 : index
    %c0_2 = arith.constant 0 : index
    %1 = vector.load %arg1[%c0_1, %c0_2] : memref<4x128xf32, #tpu.memory_space<vmem>>, vector<4x128xf32>
    %cst = arith.constant dense<0.000000e+00> : vector<40x128xf32>
    %2 = tpu.matmul %0, %1, %cst {dimension_numbers = #tpu.dot_dimension_numbers<[1], [0], [0], [1], [0, 0, 1, 1], [], []>} : vector<40x4xf32>, vector<4x128xf32>, vector<40x128xf32> -> vector<40x128xf32>
    %c0_3 = arith.constant 0 : index
    %c0_4 = arith.constant 0 : index
    %3 = vector.load %arg3[%c0_3, %c0_4] : memref<40x1xf32, #tpu.memory_space<vmem>>, vector<40x1xf32>
    %4 = vector.broadcast %3 : vector<40x1xf32> to vector<40x128xf32>
    %5 = arith.addf %2, %4 : vector<40x128xf32>
    %c0_5 = arith.constant 0 : index
    %c0_6 = arith.constant 0 : index
    %c0_7 = arith.constant 0 : index
    %6 = vector.load %arg4[%c0_5, %c0_6, %c0_7] : memref<4x40x40xf32, #tpu.memory_space<vmem>>, vector<1x40x40xf32>
    %7 = vector.shape_cast %6 : vector<1x40x40xf32> to vector<40x40xf32>
    %cst_8 = arith.constant dense<0.000000e+00> : vector<40x128xf32>
    %8 = tpu.matmul %7, %5, %cst_8 {dimension_numbers = #tpu.dot_dimension_numbers<[1], [0], [0], [1], [0, 0, 1, 1], [], []>} : vector<40x40xf32>, vector<40x128xf32>, vector<40x128xf32> -> vector<40x128xf32>
    %c0_9 = arith.constant 0 : index
    %c0_10 = arith.constant 0 : index
    %c0_11 = arith.constant 0 : index
    %9 = vector.load %arg5[%c0_9, %c0_10, %c0_11] : memref<4x40x1xf32, #tpu.memory_space<vmem>>, vector<1x40x1xf32>
    %10 = vector.shape_cast %9 : vector<1x40x1xf32> to vector<40x1xf32>
    %11 = vector.broadcast %10 : vector<40x1xf32> to vector<40x128xf32>
    %12 = arith.addf %8, %11 : vector<40x128xf32>
    %13 = math.tanh %12 : vector<40x128xf32>
    %c1 = arith.constant 1 : index
    %c0_12 = arith.constant 0 : index
    %c0_13 = arith.constant 0 : index
    %14 = vector.load %arg4[%c1, %c0_12, %c0_13] : memref<4x40x40xf32, #tpu.memory_space<vmem>>, vector<1x40x40xf32>
    %15 = vector.shape_cast %14 : vector<1x40x40xf32> to vector<40x40xf32>
    %cst_14 = arith.constant dense<0.000000e+00> : vector<40x128xf32>
    %16 = tpu.matmul %15, %13, %cst_14 {dimension_numbers = #tpu.dot_dimension_numbers<[1], [0], [0], [1], [0, 0, 1, 1], [], []>} : vector<40x40xf32>, vector<40x128xf32>, vector<40x128xf32> -> vector<40x128xf32>
    %c1_15 = arith.constant 1 : index
    %c0_16 = arith.constant 0 : index
    %c0_17 = arith.constant 0 : index
    %17 = vector.load %arg5[%c1_15, %c0_16, %c0_17] : memref<4x40x1xf32, #tpu.memory_space<vmem>>, vector<1x40x1xf32>
    %18 = vector.shape_cast %17 : vector<1x40x1xf32> to vector<40x1xf32>
    %19 = vector.broadcast %18 : vector<40x1xf32> to vector<40x128xf32>
    %20 = arith.addf %16, %19 : vector<40x128xf32>
    %21 = math.tanh %20 : vector<40x128xf32>
    %c2 = arith.constant 2 : index
    %c0_18 = arith.constant 0 : index
    %c0_19 = arith.constant 0 : index
    %22 = vector.load %arg4[%c2, %c0_18, %c0_19] : memref<4x40x40xf32, #tpu.memory_space<vmem>>, vector<1x40x40xf32>
    %23 = vector.shape_cast %22 : vector<1x40x40xf32> to vector<40x40xf32>
    %cst_20 = arith.constant dense<0.000000e+00> : vector<40x128xf32>
    %24 = tpu.matmul %23, %21, %cst_20 {dimension_numbers = #tpu.dot_dimension_numbers<[1], [0], [0], [1], [0, 0, 1, 1], [], []>} : vector<40x40xf32>, vector<40x128xf32>, vector<40x128xf32> -> vector<40x128xf32>
    %c2_21 = arith.constant 2 : index
    %c0_22 = arith.constant 0 : index
    %c0_23 = arith.constant 0 : index
    %25 = vector.load %arg5[%c2_21, %c0_22, %c0_23] : memref<4x40x1xf32, #tpu.memory_space<vmem>>, vector<1x40x1xf32>
    %26 = vector.shape_cast %25 : vector<1x40x1xf32> to vector<40x1xf32>
    %27 = vector.broadcast %26 : vector<40x1xf32> to vector<40x128xf32>
    %28 = arith.addf %24, %27 : vector<40x128xf32>
    %29 = math.tanh %28 : vector<40x128xf32>
    %c3 = arith.constant 3 : index
    %c0_24 = arith.constant 0 : index
    %c0_25 = arith.constant 0 : index
    %30 = vector.load %arg4[%c3, %c0_24, %c0_25] : memref<4x40x40xf32, #tpu.memory_space<vmem>>, vector<1x40x40xf32>
    %31 = vector.shape_cast %30 : vector<1x40x40xf32> to vector<40x40xf32>
    %cst_26 = arith.constant dense<0.000000e+00> : vector<40x128xf32>
    %32 = tpu.matmul %31, %29, %cst_26 {dimension_numbers = #tpu.dot_dimension_numbers<[1], [0], [0], [1], [0, 0, 1, 1], [], []>} : vector<40x40xf32>, vector<40x128xf32>, vector<40x128xf32> -> vector<40x128xf32>
    %c3_27 = arith.constant 3 : index
    %c0_28 = arith.constant 0 : index
    %c0_29 = arith.constant 0 : index
    %33 = vector.load %arg5[%c3_27, %c0_28, %c0_29] : memref<4x40x1xf32, #tpu.memory_space<vmem>>, vector<1x40x1xf32>
    %34 = vector.shape_cast %33 : vector<1x40x1xf32> to vector<40x1xf32>
    %35 = vector.broadcast %34 : vector<40x1xf32> to vector<40x128xf32>
    %36 = arith.addf %32, %35 : vector<40x128xf32>
    %37 = math.tanh %36 : vector<40x128xf32>
    %c0_30 = arith.constant 0 : index
    %c0_31 = arith.constant 0 : index
    %38 = vector.load %arg6[%c0_30, %c0_31] : memref<3x40xf32, #tpu.memory_space<vmem>>, vector<3x40xf32>
    %cst_32 = arith.constant dense<0.000000e+00> : vector<3x128xf32>
    %39 = tpu.matmul %38, %37, %cst_32 {dimension_numbers = #tpu.dot_dimension_numbers<[1], [0], [0], [1], [0, 0, 1, 1], [], []>} : vector<3x40xf32>, vector<40x128xf32>, vector<3x128xf32> -> vector<3x128xf32>
    %c0_33 = arith.constant 0 : index
    %c0_34 = arith.constant 0 : index
    %40 = vector.load %arg7[%c0_33, %c0_34] : memref<3x1xf32, #tpu.memory_space<vmem>>, vector<3x1xf32>
    %41 = vector.broadcast %40 : vector<3x1xf32> to vector<3x128xf32>
    %42 = arith.addf %39, %41 : vector<3x128xf32>
    %c0_35 = arith.constant 0 : index
    %c0_36 = arith.constant 0 : index
    %43 = vector.load %arg8[%c0_35, %c0_36] : memref<3x128xf32, #tpu.memory_space<vmem>>, vector<3x128xf32>
    tpu.vector_store %arg8[%c0_35, %c0_36], %42 {strides = array<i32>} : memref<3x128xf32, #tpu.memory_space<vmem>>, vector<3x128xf32>,
    return
  }
  func.func @transform_0(%arg0: i32) -> (i32, i32) {
    %c0_i32 = arith.constant 0 : i32
    %c0_i32_0 = arith.constant 0 : i32
    return %c0_i32, %arg0 : i32, i32
  }
  func.func @transform_1(%arg0: i32) -> (i32, i32) {
    %c0_i32 = arith.constant 0 : i32
    %c0_i32_0 = arith.constant 0 : i32
    %c0_i32_1 = arith.constant 0 : i32
    return %c0_i32, %c0_i32_0 : i32, i32
  }
  func.func @transform_2(%arg0: i32) -> (i32, i32) {
    %c0_i32 = arith.constant 0 : i32
    %c0_i32_0 = arith.constant 0 : i32
    %c0_i32_1 = arith.constant 0 : i32
    return %c0_i32, %c0_i32_0 : i32, i32
  }
  func.func @transform_3(%arg0: i32) -> (i32, i32, i32) {
    %c0_i32 = arith.constant 0 : i32
    %c0_i32_0 = arith.constant 0 : i32
    %c0_i32_1 = arith.constant 0 : i32
    %c0_i32_2 = arith.constant 0 : i32
    return %c0_i32, %c0_i32_0, %c0_i32_1 : i32, i32, i32
  }
  func.func @transform_4(%arg0: i32) -> (i32, i32, i32) {
    %c0_i32 = arith.constant 0 : i32
    %c0_i32_0 = arith.constant 0 : i32
    %c0_i32_1 = arith.constant 0 : i32
    %c0_i32_2 = arith.constant 0 : i32
    return %c0_i32, %c0_i32_0, %c0_i32_1 : i32, i32, i32
  }
  func.func @transform_5(%arg0: i32) -> (i32, i32) {
    %c0_i32 = arith.constant 0 : i32
    %c0_i32_0 = arith.constant 0 : i32
    %c0_i32_1 = arith.constant 0 : i32
    return %c0_i32, %c0_i32_0 : i32, i32
  }
  func.func @transform_6(%arg0: i32) -> (i32, i32) {
    %c0_i32 = arith.constant 0 : i32
    %c0_i32_0 = arith.constant 0 : i32
    %c0_i32_1 = arith.constant 0 : i32
    return %c0_i32, %c0_i32_0 : i32, i32
  }
  func.func @transform_7(%arg0: i32) -> (i32, i32) {
    %c0_i32 = arith.constant 0 : i32
    %c0_i32_0 = arith.constant 0 : i32
    return %c0_i32, %arg0 : i32, i32
  }
}

</mosaic_0001>

<bundles_post_ra>
// kernel: tpu_custom_call.1
= control target key start
LH: loop header
LB: loop body
LE: loop exit
PB: predicated region body
PF: predicated region fallthrough
CT: control target
= control target key end

     0   :  { %vm79_vm0 = vcmask 1043456   ;;  %v1164_v1 = vmov 0.0   ;;  %vm63_vm1 = vcmask 31744   ;;  %vm1165_vm2 = vmmov 0   ;;  %s1475_s0 = inlined_call_operand.vmem [shape: f32[4,128], index: 0, kind: input, shape index: {}]   ;;  %s1476_s1 = inlined_call_operand.vmem [shape: f32[40,4], index: 1, kind: input, shape index: {}]   ;;  %s1477_s2 = inlined_call_operand.vmem [shape: f32[40,1], index: 2, kind: input, shape index: {}]   ;;  %s1478_s3 = inlined_call_operand.vmem [shape: f32[4,40,40], index: 3, kind: input, shape index: {}]   ;;  %s1479_s4 = inlined_call_operand.vmem [shape: f32[4,40,1], index: 4, kind: input, shape index: {}]   ;;  %s1480_s5 = inlined_call_operand.vmem [shape: f32[3,40], index: 5, kind: input, shape index: {}]   ;;  %s1481_s6 = inlined_call_operand.vmem [shape: f32[3,1], index: 6, kind: input, shape index: {}]   ;;  %s1482_s7 = inlined_call_operand.hbm [shape: f32[3,128], index: 7, kind: output, shape index: {}]  }
   0x1   :  { %v32_v0 = vld [vmem:[%s1475_s0] sm:$0xf]  ;;  %964 = vmatprep.subr.mxu0 %v1164_v1  ;;  %1094 = vmatprep.subr.mxu1 %v1164_v1  ;;  %v30_v3 = vld [vmem:[%s1476_s1 + $0x18] sm:$0xff]  ;;  %v35_v5 = vld [vmem:[%s1477_s2 + $0x10] sm:$0xff]  ;;  %v1166_v8 = vmov 0  }
   0x2   :  { %v27_v2 = vld [vmem:[%s1476_s1] sm:$0xff]  ;;  %965 = vmatpush3.msk.msra.mxu0 %vm79_vm0, %v32_v0  ;;  %1095 = vmatpush3.msk.msra.mxu1 %vm79_vm0, %v32_v0  ;;  %v28_v6 = vld [vmem:[%s1476_s1 + $0x8] sm:$0xff]  ;;  %v36_v9 = vld [vmem:[%s1477_s2 + $0x18] sm:$0xff] }
   0x3   :  { %966 = vmatprep.mubr.msk.f32.mxu0 %vm1165_vm2, %v1164_v1  ;;  %975 = vmatprep.mubr.msk.f32.mxu1 %vm1165_vm2, %v1164_v1  ;;  %v37_v4 = vld [vmem:[%s1477_s2 + $0x20] sm:$0xff]  ;;  %v34_v10 = vld [vmem:[%s1477_s2 + $0x8] sm:$0xff]  ;;  %v29_v11 = vld [vmem:[%s1476_s1 + $0x10] sm:$0xff] }
   0x4   :  { %967 = vmatmul.mubr.msk.f32.vlgmr.msra.gmra.mxu0 %vm63_vm1, %v27_v2  ;;  %976 = vmatmul.mubr.msk.f32.vlgmr.msra.gmra.mxu1 %vm63_vm1, %v30_v3  ;;  %v31_v7 = vld [vmem:[%s1476_s1 + $0x20] sm:$0xff] }
   0x5   :  { %969 = vmatprep.mubr.msk.f32.mxu0 %vm1165_vm2, %v1164_v1  ;;  %978 = vmatprep.mubr.msk.f32.mxu1 %vm1165_vm2, %v1164_v1 }
   0x6   :  { %1100 = vset.pattern.permute.xlu0 %v1166_v8  ;;  %1101 = vset.pattern.permute.xlu1 %v1166_v8 }
   0x7   :  { %60 = vperm.xlu0 %1100, %v37_v4   ;;  %50 = vperm.xlu1 %1101, %v35_v5  }
   0x8   :  { %970 = vmatmul.mubr.msk.f32.gmra.mxu0 %vm63_vm1, %v28_v6  ;;  %979 = vmatmul.mubr.msk.f32.gmra.mxu1 %vm63_vm1, %v31_v7 }
   0x9   :  { %972 = vmatprep.mubr.msk.f32.mxu0 %vm1165_vm2, %v1164_v1  ;;  %981 = vmatprep.subr.mxu1 %v1164_v1 }
   0xa   :  { %991 = vmatprep.mubr.msk.f32.mxu1 %vm1165_vm2, %v1164_v1  ;;  %1006 = vmatprep.subr.mxu0 %v1164_v1 }
   0xb   :  { %55 = vperm.xlu0 %1100, %v36_v9   ;;  %45 = vperm.xlu1 %1101, %v34_v10  }
   0xc   :  { %12 = vsyncpa [#allocation3], 0  ;;  %973 = vmatmul.mubr.msk.f32.gmra.mxu0 %vm63_vm1, %v29_v11  ;;  %v33_v12 = vld [vmem:[%s1477_s2] sm:$0xff]  ;;  %v181_v14 = vld [vmem:[%s1479_s4 + $0x18] sm:$0xff]  ;;  %vm208_vm3 = vcmask 326656   ;;  %s1167_s23 = smov [#allocation2]  }
   0xd   :  { %v182_v13 = vld [vmem:[%s1479_s4 + $0x20] sm:$0xff]  ;;  %1016 = vmatprep.mubr.msk.f32.mxu0 %vm1165_vm2, %v1164_v1  ;;  %v180_v15 = vld [vmem:[%s1479_s4 + $0x10] sm:$0xff]  ;;  %v179_v16 = vld [vmem:[%s1479_s4 + $0x8] sm:$0xff]  ;;  %s847_s1 = sshll.u32 %s1167_s23, 4  ;;  %s848_s1 = int_to_ptr.vmem [resolvable:$true] %s847_s1 }
   0xe   :  { %v178_v17 = vld [vmem:[%s1479_s4] sm:$0xff]  ;;  %v875_v18 = vld [vmem:[%s1479_s4 + $0x48] sm:$0xff]  ;;  %v873_v20 = vld [vmem:[%s1479_s4 + $0x38] sm:$0xff]  ;;  %s1142_s24 = scalar_lea.vmem %s848_s1, 64  ;;  %p1147_p1 = scmp.lt.s32.totalorder %s848_s1, %s848_s1 }
   0xf   :  { %40 = vperm.xlu0 %1100, %v33_v12   ;;  %205 = vperm.xlu1 %1101, %v182_v13   ;;  %v874_v19 = vld [vmem:[%s1479_s4 + $0x40] sm:$0xff]  ;;  %v872_v21 = vld [vmem:[%s1479_s4 + $0x30] sm:$0xff]  ;;  %v871_v22 = vld [vmem:[%s1479_s4 + $0x28] sm:$0xff]  ;;  %p1143_p0 = scmp.ne.s32.totalorder %s848_s1, %s1142_s24  ;;  %p1148_p2 = scmp.lt.s32.totalorder %s1142_s24, %s1142_s24 }
  0x10   :  { %v890_v23 = vld [vmem:[%s1479_s4 + $0x70] sm:$0xff]  ;;  %v889_v24 = vld [vmem:[%s1479_s4 + $0x68] sm:$0xff]  ;;  %v888_v25 = vld [vmem:[%s1479_s4 + $0x60] sm:$0xff] }
  0x11   :  { %v887_v26 = vld [vmem:[%s1479_s4 + $0x58] sm:$0xff]  ;;  %v886_v27 = vld [vmem:[%s1479_s4 + $0x50] sm:$0xff]  ;;  %v903_v30 = vld [vmem:[%s1479_s4 + $0x88] sm:$0xff]  ;;  %p1149_p3 = por %p1148_p2, %p1147_p1 }
  0x12   :  { %v905_v28 = vld [vmem:[%s1479_s4 + $0x98] sm:$0xff]  ;;  %v904_v29 = vld [vmem:[%s1479_s4 + $0x90] sm:$0xff]  ;;  %v902_v31 = vld [vmem:[%s1479_s4 + $0x80] sm:$0xff] }
  0x13   :  { %200 = vperm.xlu0 %1100, %v181_v14   ;;  %195 = vperm.xlu1 %1101, %v180_v15   ;;  %v901_v32 = vld [vmem:[%s1479_s4 + $0x78] sm:$0xff]  ;;  %v761_v33 = vld [vmem:[%s1481_s6] sm:$0x7]  ;;  %v174_v55 = vld [vmem:[%s1478_s3 + $0x8] sm:$0xff]  ;;  %p1150_p4 = pnand %p1149_p3, %p1143_p0 }
  0x14   :  { %v173_v54 = vld [vmem:[%s1478_s3] sm:$0xff]  ;;  %v175_v56 = vld [vmem:[%s1478_s3 + $0x10] sm:$0xff]  ;;  %v176_v57 = vld [vmem:[%s1478_s3 + $0x18] sm:$0xff] }
  0x15   :  { %v177_v58 = vld [vmem:[%s1478_s3 + $0x20] sm:$0xff] }
  0x17   :  { %190 = vperm.xlu0 %1100, %v179_v16   ;;  %185 = vperm.xlu1 %1101, %v178_v17  }
  0x1b   :  { %353 = vperm.xlu0 %1100, %v875_v18   ;;  %348 = vperm.xlu1 %1101, %v874_v19  }
  0x1f   :  { %343 = vperm.xlu0 %1100, %v873_v20   ;;  %338 = vperm.xlu1 %1101, %v872_v21   ;;  %v866_v20 = vld [vmem:[%s1478_s3 + $0x28] sm:$0xff] }
  0x23   :  { %333 = vperm.xlu0 %1100, %v871_v22   ;;  %500 = vperm.xlu1 %1101, %v890_v23   ;;  %v867_v22 = vld [vmem:[%s1478_s3 + $0x30] sm:$0xff]  ;;  %v868_v23 = vld [vmem:[%s1478_s3 + $0x38] sm:$0xff] }
  0x27   :  { %495 = vperm.xlu0 %1100, %v889_v24   ;;  %490 = vperm.xlu1 %1101, %v888_v25   ;;  %v869_v24 = vld [vmem:[%s1478_s3 + $0x40] sm:$0xff]  ;;  %v870_v25 = vld [vmem:[%s1478_s3 + $0x48] sm:$0xff] }
  0x2b   :  { %485 = vperm.xlu0 %1100, %v887_v26   ;;  %480 = vperm.xlu1 %1101, %v886_v27  }
  0x2f   :  { %647 = vperm.xlu0 %1100, %v905_v28   ;;  %642 = vperm.xlu1 %1101, %v904_v29  }
  0x33   :  { %637 = vperm.xlu0 %1100, %v903_v30   ;;  %632 = vperm.xlu1 %1101, %v902_v31  }
  0x37   :  { %627 = vperm.xlu0 %1100, %v901_v32   ;;  %764 = vperm.xlu1 %1101, %v761_v33  }
  0x82   :  { %v61_v34 = vpop.permute.xlu0 %60  ;;  %v51_v39 = vpop.permute.xlu1 %50 }
  0x86   :  { %v56_v42 = vpop.permute.xlu0 %55  ;;  %v46_v49 = vpop.permute.xlu1 %45 }
  0x8a   :  { %v41_v52 = vpop.permute.xlu0 %40  ;;  %v206_v0 = vpop.permute.xlu1 %205 }
  0x8e   :  { %v201_v4 = vpop.permute.xlu0 %200  ;;  %v196_v6 = vpop.permute.xlu1 %195 }
  0x92   :  { %v191_v12 = vpop.permute.xlu0 %190  ;;  %v186_v14 = vpop.permute.xlu1 %185 }
  0x96   :  { %v354_v31 = vpop.permute.xlu0 %353 }
  0xc4   :  { %v149_v35 = vpop.f32.mrf.mxu0  ;;  %v164_v36 = vpop.f32.mrf.mxu1 }
  0xc5   :  { %v165_v46 = vadd.f32 %v164_v36, %v56_v42  ;;  %v150_v53 = vadd.f32 %v149_v35, %v41_v52  ;;  %v344_v36 = vpop.permute.xlu0 %343  ;;  %v882_v52 = vld [vmem:[%s1478_s3 + $0x58] sm:$0xff] }
  0xc6   :  { %v968_v37 = vpop.f32.mrf.mxu0  ;;  %v977_v38 = vpop.f32.mrf.mxu1 }
  0xc8   :  { %v154_v40 = vpop.f32.mrf.mxu0  ;;  %v169_v41 = vpop.f32.mrf.mxu1 }
  0xc9   :  { %v170_v43 = vadd.f32 %v169_v41, %v61_v34  ;;  %v155_v51 = vadd.f32 %v154_v40, %v46_v49  ;;  %v349_v34 = vpop.permute.xlu1 %348 }
  0xca   :  { %v971_v44 = vpop.f32.mrf.mxu0  ;;  %v980_v45 = vpop.f32.mrf.mxu1 }
  0xcb   :  { %982 = vmatpush3.msra.mxu1 %v170_v43  ;;  %v334_v44 = vpop.permute.xlu0 %333 }
  0xcc   :  { %v159_v47 = vpop.f32.mrf.mxu0  ;;  %983 = vmatprep.subr.mxu1 %v1164_v1 }
  0xcd   :  { %v160_v48 = vadd.f32 %v159_v47, %v51_v39  ;;  %984 = vmatpush3.msra.mxu1 %v165_v46  ;;  %v339_v42 = vpop.permute.xlu1 %338 }
  0xce   :  { %v974_v50 = vpop.f32.mrf.mxu0  ;;  %985 = vmatprep.subr.mxu1 %v1164_v1 }
  0xcf   :  { %986 = vmatpush3.msra.mxu1 %v160_v48  ;;  %v881_v50 = vld [vmem:[%s1478_s3 + $0x50] sm:$0xff] }
  0xd0   :  { %987 = vmatprep.subr.mxu1 %v1164_v1 }
  0xd1   :  { %988 = vmatpush3.msra.mxu1 %v155_v51 }
  0xd2   :  { %989 = vmatprep.subr.mxu1 %v1164_v1 }
  0xd3   :  { %990 = vmatpush3.msra.mxu1 %v150_v53  ;;  %v883_v53 = vld [vmem:[%s1478_s3 + $0x60] sm:$0xff] }
  0xd4   :  { %992 = vmatmul.mubr.msk.f32.vlgmr.msra.gmra.mxu1 %vm208_vm3, %v173_v54  ;;  %1031 = vmatprep.subr.mxu1 %v1164_v1  ;;  %v884_v54 = vld [vmem:[%s1478_s3 + $0x68] sm:$0xff] }
  0xd5   :  { %994 = vmatprep.mubr.msk.f32.mxu1 %vm1165_vm2, %v1164_v1 }
  0xd8   :  { %995 = vmatmul.mubr.msk.f32.gmra.mxu1 %vm208_vm3, %v174_v55  ;;  %v885_v55 = vld [vmem:[%s1478_s3 + $0x70] sm:$0xff] }
  0xd9   :  { %997 = vmatprep.mubr.msk.f32.mxu1 %vm1165_vm2, %v1164_v1 }
  0xdc   :  { %998 = vmatmul.mubr.msk.f32.gmra.mxu1 %vm208_vm3, %v175_v56 }
  0xdd   :  { %1000 = vmatprep.mubr.msk.f32.mxu1 %vm1165_vm2, %v1164_v1 }
  0xe0   :  { %1001 = vmatmul.mubr.msk.f32.gmra.mxu1 %vm208_vm3, %v176_v57 }
  0xe1   :  { %1003 = vmatprep.mubr.msk.f32.mxu1 %vm1165_vm2, %v1164_v1 }
  0xe4   :  { %1004 = vmatmul.mubr.msk.f32.gmra.mxu1 %vm208_vm3, %v177_v58 }
  0xe5   :  { %1041 = vmatprep.mubr.msk.f32.mxu1 %vm1165_vm2, %v1164_v1 }
 0x194   :  { %v290_v59 = vpop.f32.mrf.mxu1 }
 0x195   :  { %v291_v15 = vadd.f32 %v290_v59, %v186_v14 }
 0x196   :  { %v993_v60 = vpop.f32.mrf.mxu1 }
 0x198   :  { %v295_v61 = vpop.f32.mrf.mxu1 }
 0x199   :  { %v296_v13 = vadd.f32 %v295_v61, %v191_v12  ;;  %v501_v61 = vpop.permute.xlu1 %500 }
 0x19a   :  { %v996_v62 = vpop.f32.mrf.mxu1 }
 0x19c   :  { %v300_v63 = vpop.f32.mrf.mxu1 }
 0x19d   :  { %v301_v11 = vadd.f32 %v300_v63, %v196_v6 }
 0x19e   :  { %v999_v2 = vpop.f32.mrf.mxu1 }
 0x1a0   :  { %v305_v3 = vpop.f32.mrf.mxu1 }
 0x1a1   :  { %v306_v8 = vadd.f32 %v305_v3, %v201_v4  ;;  %v491_v3 = vpop.permute.xlu1 %490 }
 0x1a2   :  { %v1002_v5 = vpop.f32.mrf.mxu1 }
 0x1a4   :  { %v310_v7 = vpop.f32.mrf.mxu1 }
 0x1a5   :  { %v311_v9 = vadd.f32 %v310_v7, %v206_v0  ;;  %v496_v0 = vpop.permute.xlu0 %495 }
 0x1a6   :  { %v1005_v10 = vpop.f32.mrf.mxu1 }
 0x1a7   :  { %1102 = vtanh.f32 %v311_v9 }
 0x1a8   :  { %1104 = vtanh.f32 %v306_v8 }
 0x1a9   :  { %1106 = vtanh.f32 %v301_v11  ;;  %v486_v9 = vpop.permute.xlu0 %485  ;;  %v481_v11 = vpop.permute.xlu1 %480 }
 0x1aa   :  { %1108 = vtanh.f32 %v296_v13 }
 0x1ab   :  { %1110 = vtanh.f32 %v291_v15 }
 0x1b4   :  { %v1103_v16 = vpop.eup %1102 }
 0x1b5   :  { %1007 = vmatpush3.msra.mxu0 %v1103_v16  ;;  %v1105_v17 = vpop.eup %1104 }
 0x1b6   :  { %1008 = vmatprep.subr.mxu0 %v1164_v1  ;;  %v1107_v18 = vpop.eup %1106 }
 0x1b7   :  { %1009 = vmatpush3.msra.mxu0 %v1105_v17  ;;  %v1109_v19 = vpop.eup %1108  ;;  %v896_v17 = vld [vmem:[%s1478_s3 + $0x78] sm:$0xff] }
 0x1b8   :  { %1010 = vmatprep.subr.mxu0 %v1164_v1  ;;  %v1111_v21 = vpop.eup %1110 }
 0x1b9   :  { %1011 = vmatpush3.msra.mxu0 %v1107_v18 }
 0x1ba   :  { %1012 = vmatprep.subr.mxu0 %v1164_v1 }
 0x1bb   :  { %1013 = vmatpush3.msra.mxu0 %v1109_v19  ;;  %v897_v19 = vld [vmem:[%s1478_s3 + $0x80] sm:$0xff] }
 0x1bc   :  { %1014 = vmatprep.subr.mxu0 %v1164_v1 }
 0x1bd   :  { %1015 = vmatpush3.msra.mxu0 %v1111_v21  ;;  %v899_v21 = vld [vmem:[%s1478_s3 + $0x90] sm:$0xff] }
 0x1be   :  { %1017 = vmatmul.mubr.msk.f32.vlgmr.msra.gmra.mxu0 %vm208_vm3, %v866_v20  ;;  %1056 = vmatprep.subr.mxu0 %v1164_v1  ;;  %v898_v20 = vld [vmem:[%s1478_s3 + $0x88] sm:$0xff] }
 0x1bf   :  { %1019 = vmatprep.mubr.msk.f32.mxu0 %vm1165_vm2, %v1164_v1 }
 0x1c2   :  { %1020 = vmatmul.mubr.msk.f32.gmra.mxu0 %vm208_vm3, %v867_v22  ;;  %v900_v22 = vld [vmem:[%s1478_s3 + $0x98] sm:$0xff] }
 0x1c3   :  { %1022 = vmatprep.mubr.msk.f32.mxu0 %vm1165_vm2, %v1164_v1 }
 0x1c6   :  { %1023 = vmatmul.mubr.msk.f32.gmra.mxu0 %vm208_vm3, %v868_v23 }
 0x1c7   :  { %1025 = vmatprep.mubr.msk.f32.mxu0 %vm1165_vm2, %v1164_v1 }
 0x1ca   :  { %1026 = vmatmul.mubr.msk.f32.gmra.mxu0 %vm208_vm3, %v869_v24 }
 0x1cb   :  { %1028 = vmatprep.mubr.msk.f32.mxu0 %vm1165_vm2, %v1164_v1 }
 0x1ce   :  { %1029 = vmatmul.mubr.msk.f32.gmra.mxu0 %vm208_vm3, %v870_v25 }
 0x1cf   :  { %1066 = vmatprep.mubr.msk.f32.mxu0 %vm1165_vm2, %v1164_v1 }
 0x27e   :  { %v437_v26 = vpop.f32.mrf.mxu0 }
 0x27f   :  { %v438_v45 = vadd.f32 %v437_v26, %v334_v44 }
 0x280   :  { %v1018_v27 = vpop.f32.mrf.mxu0 }
 0x282   :  { %v442_v28 = vpop.f32.mrf.mxu0 }
 0x283   :  { %v443_v43 = vadd.f32 %v442_v28, %v339_v42  ;;  %v648_v28 = vpop.permute.xlu0 %647 }
 0x284   :  { %v1021_v29 = vpop.f32.mrf.mxu0 }
 0x286   :  { %v447_v30 = vpop.f32.mrf.mxu0 }
 0x287   :  { %v448_v41 = vadd.f32 %v447_v30, %v344_v36 }
 0x288   :  { %v1024_v32 = vpop.f32.mrf.mxu0 }
 0x28a   :  { %v452_v33 = vpop.f32.mrf.mxu0 }
 0x28b   :  { %v453_v38 = vadd.f32 %v452_v33, %v349_v34  ;;  %v638_v33 = vpop.permute.xlu0 %637 }
 0x28c   :  { %v1027_v35 = vpop.f32.mrf.mxu0 }
 0x28e   :  { %v457_v37 = vpop.f32.mrf.mxu0 }
 0x28f   :  { %v458_v39 = vadd.f32 %v457_v37, %v354_v31  ;;  %v643_v31 = vpop.permute.xlu1 %642 }
 0x290   :  { %v1030_v40 = vpop.f32.mrf.mxu0 }
 0x291   :  { %1112 = vtanh.f32 %v458_v39 }
 0x292   :  { %1114 = vtanh.f32 %v453_v38 }
 0x293   :  { %1116 = vtanh.f32 %v448_v41  ;;  %v633_v39 = vpop.permute.xlu1 %632  ;;  %v628_v41 = vpop.permute.xlu0 %627 }
 0x294   :  { %1118 = vtanh.f32 %v443_v43 }
 0x295   :  { %1120 = vtanh.f32 %v438_v45 }
 0x29e   :  { %v1113_v46 = vpop.eup %1112 }
 0x29f   :  { %1032 = vmatpush3.msra.mxu1 %v1113_v46  ;;  %v1115_v47 = vpop.eup %1114 }
 0x2a0   :  { %1033 = vmatprep.subr.mxu1 %v1164_v1  ;;  %v1117_v48 = vpop.eup %1116 }
 0x2a1   :  { %1034 = vmatpush3.msra.mxu1 %v1115_v47  ;;  %v1119_v49 = vpop.eup %1118  ;;  %v760_v47 = vld [vmem:[%s1480_s5] sm:$0x7] }
 0x2a2   :  { %1035 = vmatprep.subr.mxu1 %v1164_v1  ;;  %v1121_v51 = vpop.eup %1120 }
 0x2a3   :  { %1036 = vmatpush3.msra.mxu1 %v1117_v48 }
 0x2a4   :  { %1037 = vmatprep.subr.mxu1 %v1164_v1 }
 0x2a5   :  { %1038 = vmatpush3.msra.mxu1 %v1119_v49  ;;  %v765_v49 = vpop.permute.xlu1 %764 }
 0x2a6   :  { %1039 = vmatprep.subr.mxu1 %v1164_v1 }
 0x2a7   :  { %1040 = vmatpush3.msra.mxu1 %v1121_v51 }
 0x2a8   :  { %1042 = vmatmul.mubr.msk.f32.vlgmr.msra.gmra.mxu1 %vm208_vm3, %v881_v50  ;;  %1081 = vmatprep.subr.mxu1 %v1164_v1 }
 0x2a9   :  { %1044 = vmatprep.mubr.msk.f32.mxu1 %vm1165_vm2, %v1164_v1 }
 0x2ac   :  { %1045 = vmatmul.mubr.msk.f32.gmra.mxu1 %vm208_vm3, %v882_v52 }
 0x2ad   :  { %1047 = vmatprep.mubr.msk.f32.mxu1 %vm1165_vm2, %v1164_v1 }
 0x2b0   :  { %1048 = vmatmul.mubr.msk.f32.gmra.mxu1 %vm208_vm3, %v883_v53 }
 0x2b1   :  { %1050 = vmatprep.mubr.msk.f32.mxu1 %vm1165_vm2, %v1164_v1 }
 0x2b4   :  { %1051 = vmatmul.mubr.msk.f32.gmra.mxu1 %vm208_vm3, %v884_v54 }
 0x2b5   :  { %1053 = vmatprep.mubr.msk.f32.mxu1 %vm1165_vm2, %v1164_v1 }
 0x2b8   :  { %1054 = vmatmul.mubr.msk.f32.gmra.mxu1 %vm208_vm3, %v885_v55 }
 0x2b9   :  { %1091 = vmatprep.mubr.msk.f32.mxu1 %vm1165_vm2, %v1164_v1 }
 0x368   :  { %v584_v56 = vpop.f32.mrf.mxu1 }
 0x369   :  { %v585_v12 = vadd.f32 %v584_v56, %v481_v11 }
 0x36a   :  { %v1043_v57 = vpop.f32.mrf.mxu1 }
 0x36c   :  { %v589_v58 = vpop.f32.mrf.mxu1 }
 0x36d   :  { %v590_v10 = vadd.f32 %v589_v58, %v486_v9 }
 0x36e   :  { %v1046_v59 = vpop.f32.mrf.mxu1 }
 0x370   :  { %v594_v60 = vpop.f32.mrf.mxu1 }
 0x371   :  { %v595_v8 = vadd.f32 %v594_v60, %v491_v3 }
 0x372   :  { %v1049_v62 = vpop.f32.mrf.mxu1 }
 0x374   :  { %v599_v63 = vpop.f32.mrf.mxu1 }
 0x375   :  { %v600_v5 = vadd.f32 %v599_v63, %v496_v0 }
 0x376   :  { %v1052_v2 = vpop.f32.mrf.mxu1 }
 0x378   :  { %v604_v4 = vpop.f32.mrf.mxu1 }
 0x379   :  { %v605_v6 = vadd.f32 %v604_v4, %v501_v61 }
 0x37a   :  { %v1055_v7 = vpop.f32.mrf.mxu1 }
 0x37b   :  { %1122 = vtanh.f32 %v605_v6 }
 0x37c   :  { %1124 = vtanh.f32 %v600_v5 }
 0x37d   :  { %1126 = vtanh.f32 %v595_v8 }
 0x37e   :  { %1128 = vtanh.f32 %v590_v10 }
 0x37f   :  { %1130 = vtanh.f32 %v585_v12 }
 0x388   :  { %v1123_v13 = vpop.eup %1122 }
 0x389   :  { %1057 = vmatpush3.msra.mxu0 %v1123_v13  ;;  %v1125_v14 = vpop.eup %1124 }
 0x38a   :  { %1058 = vmatprep.subr.mxu0 %v1164_v1  ;;  %v1127_v15 = vpop.eup %1126 }
 0x38b   :  { %1059 = vmatpush3.msra.mxu0 %v1125_v14  ;;  %v1129_v16 = vpop.eup %1128 }
 0x38c   :  { %1060 = vmatprep.subr.mxu0 %v1164_v1  ;;  %v1131_v18 = vpop.eup %1130 }
 0x38d   :  { %1061 = vmatpush3.msra.mxu0 %v1127_v15 }
 0x38e   :  { %1062 = vmatprep.subr.mxu0 %v1164_v1 }
 0x38f   :  { %1063 = vmatpush3.msra.mxu0 %v1129_v16 }
 0x390   :  { %1064 = vmatprep.subr.mxu0 %v1164_v1 }
 0x391   :  { %1065 = vmatpush3.msra.mxu0 %v1131_v18 }
 0x392   :  { %1067 = vmatmul.mubr.msk.f32.vlgmr.msra.gmra.mxu0 %vm208_vm3, %v896_v17 }
 0x393   :  { %1069 = vmatprep.mubr.msk.f32.mxu0 %vm1165_vm2, %v1164_v1 }
 0x396   :  { %1070 = vmatmul.mubr.msk.f32.gmra.mxu0 %vm208_vm3, %v897_v19 }
 0x397   :  { %1072 = vmatprep.mubr.msk.f32.mxu0 %vm1165_vm2, %v1164_v1 }
 0x39a   :  { %1073 = vmatmul.mubr.msk.f32.gmra.mxu0 %vm208_vm3, %v898_v20 }
 0x39b   :  { %1075 = vmatprep.mubr.msk.f32.mxu0 %vm1165_vm2, %v1164_v1 }
 0x39e   :  { %1076 = vmatmul.mubr.msk.f32.gmra.mxu0 %vm208_vm3, %v899_v21 }
 0x39f   :  { %1078 = vmatprep.mubr.msk.f32.mxu0 %vm1165_vm2, %v1164_v1 }
 0x3a2   :  { %1079 = vmatmul.mubr.msk.f32.gmra.mxu0 %vm208_vm3, %v900_v22 }
 0x452   :  { %v731_v23 = vpop.f32.mrf.mxu0 }
 0x453   :  { %v732_v42 = vadd.f32 %v731_v23, %v628_v41 }
 0x454   :  { %v1068_v24 = vpop.f32.mrf.mxu0 }
 0x456   :  { %v736_v25 = vpop.f32.mrf.mxu0 }
 0x457   :  { %v737_v40 = vadd.f32 %v736_v25, %v633_v39 }
 0x458   :  { %v1071_v26 = vpop.f32.mrf.mxu0 }
 0x45a   :  { %v741_v27 = vpop.f32.mrf.mxu0 }
 0x45b   :  { %v742_v38 = vadd.f32 %v741_v27, %v638_v33 }
 0x45c   :  { %v1074_v29 = vpop.f32.mrf.mxu0 }
 0x45e   :  { %v746_v30 = vpop.f32.mrf.mxu0 }
 0x45f   :  { %v747_v35 = vadd.f32 %v746_v30, %v643_v31 }
 0x460   :  { %v1077_v32 = vpop.f32.mrf.mxu0 }
 0x462   :  { %v751_v34 = vpop.f32.mrf.mxu0 }
 0x463   :  { %v752_v36 = vadd.f32 %v751_v34, %v648_v28 }
 0x464   :  { %v1080_v37 = vpop.f32.mrf.mxu0 }
 0x465   :  { %1132 = vtanh.f32 %v752_v36 }
 0x466   :  { %1134 = vtanh.f32 %v747_v35 }
 0x467   :  { %1136 = vtanh.f32 %v742_v38 }
 0x468   :  { %1138 = vtanh.f32 %v737_v40 }
 0x469   :  { %1140 = vtanh.f32 %v732_v42 }
 0x472   :  { %v1133_v43 = vpop.eup %1132 }
 0x473   :  { %1082 = vmatpush3.msra.mxu1 %v1133_v43  ;;  %v1135_v44 = vpop.eup %1134 }
 0x474   :  { %1083 = vmatprep.subr.mxu1 %v1164_v1  ;;  %v1137_v45 = vpop.eup %1136 }
 0x475   :  { %1084 = vmatpush3.msra.mxu1 %v1135_v44  ;;  %v1139_v46 = vpop.eup %1138 }
 0x476   :  { %1085 = vmatprep.subr.mxu1 %v1164_v1  ;;  %v1141_v48 = vpop.eup %1140 }
 0x477   :  { %1086 = vmatpush3.msra.mxu1 %v1137_v45 }
 0x478   :  { %1087 = vmatprep.subr.mxu1 %v1164_v1 }
 0x479   :  { %1088 = vmatpush3.msra.mxu1 %v1139_v46 }
 0x47a   :  { %1089 = vmatprep.subr.mxu1 %v1164_v1 }
 0x47b   :  { %1090 = vmatpush3.msra.mxu1 %v1141_v48 }
 0x47c   :  { %1092 = vmatmul.mubr.msk.f32.vlgmr.msra.gmra.mxu1 %vm208_vm3, %v760_v47 }
 0x53c   :  { %v836_v50 = vpop.f32.mrf.mxu1 }
 0x53d   :  { %v837_v51 = vadd.f32 %v836_v50, %v765_v49 }
 0x53e   :  { %v1093_v52 = vpop.f32.mrf.mxu1 }
 0x53f   :  { %840 = vst [vmem:[#allocation2] sm:$0x7] %v837_v51 }
 0x540   :  { %1153 = shalt.err (!%p1150_p4)
}
 0x541   :  { %850 = dma.vmem_to_hbm [thread:$0]  %s848_s1, 64, %s1482_s7, [#allocation3]  }
 0x542   :  { %1162 = dma.done.wait [#allocation3], 64  }
 0x543   :  { %1163 = vsyncadd [#allocation3], 4294967232 }
 0x544   :  { %854 = vsyncpa [#allocation3], 1 }

</bundles_post_ra>
